<compile_context>
chip_gen: v7x
topology: tpu7x:2x2x1
jax: 0.10.0
libtpu: 0.0.40
codegen_flags: <defaults>
</compile_context>

<pallas_src>
import functools

import jax
import jax.numpy as jnp
import numpy as np
from jax import lax
from jax.experimental import pallas as pl
from jax.experimental.pallas import tpu as pltpu


def _round_up(a, b):
    return (a + b - 1) // b * b


def _gemm_stats_kernel(x_ref, w_ref, y_ref, psum_ref, psq_ref, acc_ref):
    """Conv-as-GEMM (bf16 x bf16 -> f32 acc) + per-channel partial sum / sum-of-squares."""
    k = pl.program_id(1)

    @pl.when(k == 0)
    def _():
        acc_ref[...] = jnp.zeros_like(acc_ref)

    acc_ref[...] += jnp.dot(x_ref[...], w_ref[...],
                            preferred_element_type=jnp.float32)

    @pl.when(k == pl.num_programs(1) - 1)
    def _():
        y = acc_ref[...]
        y_ref[...] = y.astype(y_ref.dtype)
        # No bias is added, so zero-padded M rows produce exactly-zero GEMM rows and
        # the partial statistics are exact without any masking.
        psum_ref[...] = jnp.sum(y, axis=0, keepdims=True)[None]
        psq_ref[...] = jnp.sum(y * y, axis=0, keepdims=True)[None]


def _bn_act_kernel(y_ref, scale_ref, shift_ref, o_ref, *, act):
    """Fused batch-norm affine (folded per-channel scale/shift) + optional ReLU6."""
    v = y_ref[...].astype(jnp.float32) * scale_ref[...] + shift_ref[...]
    if act:
        v = jnp.minimum(jnp.maximum(v, 0.0), 6.0)  # ReLU6
    o_ref[...] = v.astype(o_ref.dtype)


def _im2col(x_nhwc, kh, kw, stride, padding):
    """HBM-side patch extraction. kernel_size==1 is a pure (strided) slice + reshape."""
    n, h, w, c = x_nhwc.shape
    ho = (h + 2 * padding - kh) // stride + 1
    wo = (w + 2 * padding - kw) // stride + 1
    xp = x_nhwc
    if padding > 0:
        xp = jnp.pad(xp, ((0, 0), (padding, padding), (padding, padding), (0, 0)))
    if kh == 1 and kw == 1:
        patches = xp[:, 0:stride * (ho - 1) + 1:stride,
                        0:stride * (wo - 1) + 1:stride, :]
        return patches.reshape(n * ho * wo, c), ho, wo
    # TODO(synk): move the kh*kw tap gather into the Pallas kernel (extra grid axis with
    # a strided index_map) to avoid materializing the inflated patches array in HBM.
    cols = []
    for i in range(kh):
        for j in range(kw):
            cols.append(xp[:, i:i + stride * (ho - 1) + 1:stride,
                              j:j + stride * (wo - 1) + 1:stride, :])
    patches = jnp.concatenate(cols, axis=-1)  # (n, ho, wo, kh*kw*c); (kh, kw, cin) order
    return patches.reshape(n * ho * wo, kh * kw * c), ho, wo


def conv_bn_relu6(x_nchw, weight, bias, gamma, beta, *, kernel_size=1, stride=1,
                  padding=0, group=1, act=True, eps=1e-5, tm=512, k_max_block=1024):
    assert group == 1  # TODO(synk): grouped/depthwise convolution path not implemented
    # Train-mode BatchNorm subtracts the batch mean, which absorbs the conv bias exactly,
    # so the bias add is redundant (dropping it also avoids mean/var cancellation issues).
    del bias

    n, cin, h, w = x_nchw.shape
    cout = weight.shape[0]

    x_nhwc = jnp.transpose(x_nchw, (0, 2, 3, 1))
    patches, ho, wo = _im2col(x_nhwc, kernel_size, kernel_size, stride, padding)
    m, kdim = patches.shape

    # --- tiling --------------------------------------------------------------
    cout_pad = _round_up(cout, 128)              # lane-dense N for MXU + stores
    m_pad = _round_up(m, tm)
    if kdim > k_max_block:                       # tile K so blocks fit v5e VMEM
        tk = k_max_block
        k_pad = _round_up(kdim, tk)
    else:
        tk = kdim
        k_pad = kdim
    nm, nk = m_pad // tm, k_pad // tk

    # --- operand prep: bf16 MXU feeds, zero padding --------------------------
    patches = jnp.pad(patches.astype(jnp.bfloat16),
                      ((0, m_pad - m), (0, k_pad - kdim)))
    # PyTorch weight (Cout, Cin, kh, kw) -> (kh, kw, Cin, Cout) -> (K, Cout_pad).
    w2 = jnp.transpose(weight, (2, 3, 1, 0)).reshape(kdim, cout)
    w2 = jnp.pad(w2.astype(jnp.bfloat16), ((0, k_pad - kdim), (0, cout_pad - cout)))

    # Explicit VMEM budget: double-buffered bf16 blocks + f32 accumulator scratch.
    est = (2 * tm * tk + 2 * tk * cout_pad + 2 * tm * cout_pad) * 2 \
        + tm * cout_pad * 4 + 8 * cout_pad * 4
    vmem_limit = int(min(48 * 1024 * 1024, max(32 * 1024 * 1024, 2 * est)))

    # --- pass 1: GEMM + per-channel partial statistics -----------------------
    y, psum, psq = pl.pallas_call(
        _gemm_stats_kernel,
        out_shape=(
            jax.ShapeDtypeStruct((m_pad, cout_pad), jnp.bfloat16),
            jax.ShapeDtypeStruct((nm, 1, cout_pad), jnp.float32),
            jax.ShapeDtypeStruct((nm, 1, cout_pad), jnp.float32),
        ),
        grid_spec=pltpu.PrefetchScalarGridSpec(
            num_scalar_prefetch=0,
            grid=(nm, nk),
            in_specs=[
                pl.BlockSpec((tm, tk), lambda i, k: (i, k)),
                pl.BlockSpec((tk, cout_pad), lambda i, k: (k, 0)),
            ],
            out_specs=[
                pl.BlockSpec((tm, cout_pad), lambda i, k: (i, 0)),
                pl.BlockSpec((1, 1, cout_pad), lambda i, k: (i, 0, 0)),
                pl.BlockSpec((1, 1, cout_pad), lambda i, k: (i, 0, 0)),
            ],
            scratch_shapes=[pltpu.VMEM((tm, cout_pad), jnp.float32)],
        ),
        compiler_params=pltpu.CompilerParams(
            dimension_semantics=("parallel", "arbitrary"),
            vmem_limit_bytes=vmem_limit),
    )(patches, w2)

    # --- BatchNorm batch statistics (biased variance, as in torch's forward) --
    s = jnp.sum(psum, axis=0)                    # (1, cout_pad), f32
    sq = jnp.sum(psq, axis=0)
    mean = s / m
    var = jnp.maximum(sq / m - mean * mean, 0.0)
    gamma_p = jnp.pad(gamma.astype(jnp.float32), (0, cout_pad - cout)).reshape(1, cout_pad)
    beta_p = jnp.pad(beta.astype(jnp.float32), (0, cout_pad - cout)).reshape(1, cout_pad)
    scale = gamma_p * lax.rsqrt(var + eps)
    shift = beta_p - mean * scale

    # --- pass 2: fused BN affine + ReLU6 (lane-dense elementwise) -------------
    out = pl.pallas_call(
        functools.partial(_bn_act_kernel, act=act),
        out_shape=jax.ShapeDtypeStruct((m_pad, cout_pad), jnp.float32),
        grid_spec=pltpu.PrefetchScalarGridSpec(
            num_scalar_prefetch=0,
            grid=(nm,),
            in_specs=[
                pl.BlockSpec((tm, cout_pad), lambda i: (i, 0)),
                pl.BlockSpec((1, cout_pad), lambda i: (0, 0)),
                pl.BlockSpec((1, cout_pad), lambda i: (0, 0)),
            ],
            out_specs=pl.BlockSpec((tm, cout_pad), lambda i: (i, 0)),
        ),
        compiler_params=pltpu.CompilerParams(
            dimension_semantics=("parallel",),
            vmem_limit_bytes=vmem_limit),
    )(y, scale, shift)

    out = out[:m, :cout].reshape(n, ho, wo, cout)
    return jnp.transpose(out, (0, 3, 1, 2))      # back to NCHW


if __name__ == "__main__":
    key = jax.random.PRNGKey(0)
    k1, k2, k3, k4, k5 = jax.random.split(key, 5)

    N, Cin, H, W = 2, 4, 16, 16
    Cout, ksz, stride, pad = 8, 1, 1, 0  # module defaults: kernel_size=1, stride=1, padding=0

    x = jax.random.normal(k1, (N, Cin, H, W), jnp.float32)
    weight = jax.random.normal(k2, (Cout, Cin, ksz, ksz), jnp.float32) * 0.1
    bias = jax.random.normal(k3, (Cout,), jnp.float32) * 0.1
    gamma = jax.random.uniform(k4, (Cout,), jnp.float32, minval=0.5, maxval=1.5)
    beta = jax.random.normal(k5, (Cout,), jnp.float32) * 0.1

    out = conv_bn_relu6(x, weight, bias, gamma, beta,
                        kernel_size=ksz, stride=stride, padding=pad, group=1, act=True)
    out = jax.block_until_ready(out)

    # Pure-JAX f32 reference of the PyTorch forward (train-mode BN, ReLU6), bias included:
    # the bias cancels under batch-norm, so the bias-free kernel must match it.
    y = lax.conv_general_dilated(x, weight, (stride, stride), [(pad, pad), (pad, pad)],
                                 dimension_numbers=("NCHW", "OIHW", "NCHW"))
    y = y + bias[None, :, None, None]
    mu = y.mean(axis=(0, 2, 3), keepdims=True)
    vv = y.var(axis=(0, 2, 3), keepdims=True)
    ref = (y - mu) * lax.rsqrt(vv + 1e-5) * gamma[None, :, None, None] + beta[None, :, None, None]
    ref = jnp.clip(ref, 0.0, 6.0)

    # bf16 MXU operands and bf16 intermediate y -> looser tolerance than pure f32.
    assert np.allclose(np.asarray(out), np.asarray(ref), rtol=5e-2, atol=5e-2)
    print("KERNEL_OK")
</pallas_src>

<mosaic_0001>
module attributes {stable_mosaic.version = 11 : i64} {
  func.func @_gemm_stats_kernel(%arg0: i32, %arg1: i32, %arg2: memref<512x4xbf16, #tpu.memory_space<vmem>>, %arg3: memref<4x128xbf16, #tpu.memory_space<vmem>>, %arg4: memref<512x128xbf16, #tpu.memory_space<vmem>>, %arg5: memref<1x1x128xf32, #tpu.memory_space<vmem>>, %arg6: memref<1x1x128xf32, #tpu.memory_space<vmem>>, %arg7: memref<512x128xf32, #tpu.memory_space<vmem>>) attributes {dimension_semantics = [#tpu.dimension_semantics<parallel>, #tpu.dimension_semantics<arbitrary>], iteration_bounds = array<i64: 1, 1>, scalar_prefetch = 0 : i64, scratch_operands = 1 : i64, tpu.core_type = #tpu.core_type<tc>, window_params = [{transform_indices = @transform_0, window_bounds = array<i64: 512, 4>}, {transform_indices = @transform_1, window_bounds = array<i64: 4, 128>}, {transform_indices = @transform_2, window_bounds = array<i64: 512, 128>}, {transform_indices = @transform_3, window_bounds = array<i64: 1, 1, 128>}, {transform_indices = @transform_4, window_bounds = array<i64: 1, 1, 128>}]} {
    %c0_i32 = arith.constant 0 : i32
    %0 = arith.cmpi eq, %arg1, %c0_i32 : i32
    %1 = arith.extui %0 : i1 to i32
    %c0_i32_0 = arith.constant 0 : i32
    %2 = arith.cmpi ne, %1, %c0_i32_0 : i32
    scf.if %2 {
      %cst_10 = arith.constant 0.000000e+00 : f32
      %12 = vector.broadcast %cst_10 : f32 to vector<512x128xf32>
      %c0_11 = arith.constant 0 : index
      %c0_12 = arith.constant 0 : index
      %13 = vector.load %arg7[%c0_11, %c0_12] : memref<512x128xf32, #tpu.memory_space<vmem>>, vector<512x128xf32>
      tpu.vector_store %arg7[%c0_11, %c0_12], %12 {strides = array<i32>} : memref<512x128xf32, #tpu.memory_space<vmem>>, vector<512x128xf32>,
    } else {
    }
    %c0 = arith.constant 0 : index
    %c0_1 = arith.constant 0 : index
    %3 = vector.load %arg7[%c0, %c0_1] : memref<512x128xf32, #tpu.memory_space<vmem>>, vector<512x128xf32>
    %c0_2 = arith.constant 0 : index
    %c0_3 = arith.constant 0 : index
    %4 = vector.load %arg2[%c0_2, %c0_3] : memref<512x4xbf16, #tpu.memory_space<vmem>>, vector<512x4xbf16>
    %c0_4 = arith.constant 0 : index
    %c0_5 = arith.constant 0 : index
    %5 = vector.load %arg3[%c0_4, %c0_5] : memref<4x128xbf16, #tpu.memory_space<vmem>>, vector<4x128xbf16>
    %cst = arith.constant dense<0.000000e+00> : vector<512x128xf32>
    %6 = tpu.matmul %4, %5, %cst {dimension_numbers = #tpu.dot_dimension_numbers<[1], [0], [0], [1], [0, 0, 1, 1], [], []>} : vector<512x4xbf16>, vector<4x128xbf16>, vector<512x128xf32> -> vector<512x128xf32>
    %7 = arith.addf %3, %6 : vector<512x128xf32>
    %c0_6 = arith.constant 0 : index
    %c0_7 = arith.constant 0 : index
    %8 = vector.load %arg7[%c0_6, %c0_7] : memref<512x128xf32, #tpu.memory_space<vmem>>, vector<512x128xf32>
    tpu.vector_store %arg7[%c0_6, %c0_7], %7 {strides = array<i32>} : memref<512x128xf32, #tpu.memory_space<vmem>>, vector<512x128xf32>,
    %c0_i32_8 = arith.constant 0 : i32
    %9 = arith.cmpi eq, %arg1, %c0_i32_8 : i32
    %10 = arith.extui %9 : i1 to i32
    %c0_i32_9 = arith.constant 0 : i32
    %11 = arith.cmpi ne, %10, %c0_i32_9 : i32
    scf.if %11 {
      %c0_10 = arith.constant 0 : index
      %c0_11 = arith.constant 0 : index
      %12 = vector.load %arg7[%c0_10, %c0_11] : memref<512x128xf32, #tpu.memory_space<vmem>>, vector<512x128xf32>
      %13 = arith.truncf %12 : vector<512x128xf32> to vector<512x128xbf16>
      %c0_12 = arith.constant 0 : index
      %c0_13 = arith.constant 0 : index
      %14 = vector.load %arg4[%c0_12, %c0_13] : memref<512x128xbf16, #tpu.memory_space<vmem>>, vector<512x128xbf16>
      tpu.vector_store %arg4[%c0_12, %c0_13], %13 {strides = array<i32>} : memref<512x128xbf16, #tpu.memory_space<vmem>>, vector<512x128xbf16>,
      %cst_14 = arith.constant dense<0.000000e+00> : vector<128xf32>
      %15 = vector.multi_reduction <add>, %12, %cst_14 [0] : vector<512x128xf32> to vector<128xf32>
      %16 = vector.shape_cast %15 : vector<128xf32> to vector<1x128xf32>
      %17 = vector.shape_cast %16 : vector<1x128xf32> to vector<1x1x128xf32>
      %c0_15 = arith.constant 0 : index
      %c0_16 = arith.constant 0 : index
      %c0_17 = arith.constant 0 : index
      %18 = vector.load %arg5[%c0_15, %c0_16, %c0_17] : memref<1x1x128xf32, #tpu.memory_space<vmem>>, vector<1x1x128xf32>
      tpu.vector_store %arg5[%c0_15, %c0_16, %c0_17], %17 {strides = array<i32>} : memref<1x1x128xf32, #tpu.memory_space<vmem>>, vector<1x1x128xf32>,
      %19 = arith.mulf %12, %12 : vector<512x128xf32>
      %cst_18 = arith.constant dense<0.000000e+00> : vector<128xf32>
      %20 = vector.multi_reduction <add>, %19, %cst_18 [0] : vector<512x128xf32> to vector<128xf32>
      %21 = vector.shape_cast %20 : vector<128xf32> to vector<1x128xf32>
      %22 = vector.shape_cast %21 : vector<1x128xf32> to vector<1x1x128xf32>
      %c0_19 = arith.constant 0 : index
      %c0_20 = arith.constant 0 : index
      %c0_21 = arith.constant 0 : index
      %23 = vector.load %arg6[%c0_19, %c0_20, %c0_21] : memref<1x1x128xf32, #tpu.memory_space<vmem>>, vector<1x1x128xf32>
      tpu.vector_store %arg6[%c0_19, %c0_20, %c0_21], %22 {strides = array<i32>} : memref<1x1x128xf32, #tpu.memory_space<vmem>>, vector<1x1x128xf32>,
    } else {
    }
    return
  }
  func.func @transform_0(%arg0: i32, %arg1: i32) -> (i32, i32) {
    %c0_i32 = arith.constant 0 : i32
    return %arg0, %arg1 : i32, i32
  }
  func.func @transform_1(%arg0: i32, %arg1: i32) -> (i32, i32) {
    %c0_i32 = arith.constant 0 : i32
    %c0_i32_0 = arith.constant 0 : i32
    return %arg1, %c0_i32 : i32, i32
  }
  func.func @transform_2(%arg0: i32, %arg1: i32) -> (i32, i32) {
    %c0_i32 = arith.constant 0 : i32
    %c0_i32_0 = arith.constant 0 : i32
    return %arg0, %c0_i32 : i32, i32
  }
  func.func @transform_3(%arg0: i32, %arg1: i32) -> (i32, i32, i32) {
    %c0_i32 = arith.constant 0 : i32
    %c0_i32_0 = arith.constant 0 : i32
    %c0_i32_1 = arith.constant 0 : i32
    return %arg0, %c0_i32, %c0_i32_0 : i32, i32, i32
  }
  func.func @transform_4(%arg0: i32, %arg1: i32) -> (i32, i32, i32) {
    %c0_i32 = arith.constant 0 : i32
    %c0_i32_0 = arith.constant 0 : i32
    %c0_i32_1 = arith.constant 0 : i32
    return %arg0, %c0_i32, %c0_i32_0 : i32, i32, i32
  }
}

</mosaic_0001>

<bundles_post_ra>
// kernel: tpu_custom_call.1
= control target key start
LH: loop header
LB: loop body
LE: loop exit
PB: predicated region body
PF: predicated region fallthrough
CT: control target
= control target key end

     0   :  { %10 = vsyncpa [#allocation4], 0  ;;  %vm471_vm0 = vcmask 1041408   ;;  %vm374_vm1 = vcmask 31744   ;;  %s2516_s0 = inlined_call_operand.vmem [shape: bf16[512,4], index: 0, kind: input, shape index: {}]   ;;  %s2517_s1 = inlined_call_operand.vmem [shape: bf16[4,128], index: 1, kind: input, shape index: {}]   ;;  %s2518_s2 = inlined_call_operand.hbm [shape: bf16[512,128], index: 2, kind: output, shape index: {0}]   ;;  %s2519_s3 = inlined_call_operand.hbm [shape: f32[1,1,128], index: 3, kind: output, shape index: {1}]   ;;  %s2520_s4 = inlined_call_operand.hbm [shape: f32[1,1,128], index: 4, kind: output, shape index: {2}]  }
   0x1   :  { %v213_v0 = vld [vmem:[%s2517_s1] sm:$0x3]  ;;  %v2018_v3 = vld [vmem:[%s2516_s0 + $0x8] sm:$0xff]   ;;  %v2019_v4 = vld [vmem:[%s2516_s0 + $0x10] sm:$0xff]  }
   0x2   :  { %v2017_v1 = vld [vmem:[%s2516_s0] sm:$0xff]   ;;  %2010 = vmatprep.subr.msk.bf16.mxu0 %vm471_vm0, %v213_v0  ;;  %v473_v2 = vsel %vm471_vm0, %v213_v0, 0  ;;  %2011 = vmatprep.subr.msk.bf16.mxu1 %vm471_vm0, %v213_v0  ;;  %v2020_v5 = vld [vmem:[%s2516_s0 + $0x18] sm:$0xff]   ;;  %v2022_v7 = vld [vmem:[%s2516_s0 + $0x28] sm:$0xff]  }
   0x3   :  { %1943 = vmatpush3.bf16.msra.mxu0 %v473_v2  ;;  %1944 = vmatprep.mubr.msk.bf16.mxu0 %vm374_vm1, %v2017_v1  ;;  %v2021_v6 = vld [vmem:[%s2516_s0 + $0x20] sm:$0xff]   ;;  %v2023_v8 = vld [vmem:[%s2516_s0 + $0x30] sm:$0xff]   ;;  %v2034_v10 = vld [vmem:[%s2516_s0 + $0x88] sm:$0xff]  }
   0x4   :  { %2009 = vmatpush3.bf16.msra.mxu1 %v473_v2  ;;  %v2033_v9 = vld [vmem:[%s2516_s0 + $0x80] sm:$0xff]   ;;  %v2035_v11 = vld [vmem:[%s2516_s0 + $0x90] sm:$0xff]   ;;  %v2024_v12 = vld [vmem:[%s2516_s0 + $0x38] sm:$0xff]  }
   0x5   :  { %1976 = vmatprep.mubr.msk.bf16.mxu1 %vm374_vm1, %v2033_v9  ;;  %v2036_v13 = vld [vmem:[%s2516_s0 + $0x98] sm:$0xff]   ;;  %v2037_v14 = vld [vmem:[%s2516_s0 + $0xa0] sm:$0xff]   ;;  %v2038_v16 = vld [vmem:[%s2516_s0 + $0xa8] sm:$0xff]  }
   0x6   :  { %1945 = vmatmul.mubr.msk.bf16.vlgmr.msra.gmra.mrb[0].mxu0 %vm374_vm1, %v2018_v3  ;;  %v2025_v15 = vld [vmem:[%s2516_s0 + $0x40] sm:$0xff]  }
   0x7   :  { %1948 = vmatprep.mubr.msk.bf16.mxu0 %vm374_vm1, %v2019_v4  ;;  %1977 = vmatmul.mubr.msk.bf16.vlgmr.msra.gmra.mrb[0].mxu1 %vm374_vm1, %v2034_v10 }
   0x8   :  { %1980 = vmatprep.mubr.msk.bf16.mxu1 %vm374_vm1, %v2035_v11 }
   0xe   :  { %1949 = vmatmul.mubr.msk.bf16.gmra.mrb[4].mxu0 %vm374_vm1, %v2020_v5 }
   0xf   :  { %1952 = vmatprep.mubr.msk.bf16.mxu0 %vm374_vm1, %v2021_v6  ;;  %1981 = vmatmul.mubr.msk.bf16.gmra.mrb[4].mxu1 %vm374_vm1, %v2036_v13 }
  0x10   :  { %1984 = vmatprep.mubr.msk.bf16.mxu1 %vm374_vm1, %v2037_v14 }
  0x16   :  { %1953 = vmatmul.mubr.msk.bf16.gmra.mrb[8].mxu0 %vm374_vm1, %v2022_v7 }
  0x17   :  { %1956 = vmatprep.mubr.msk.bf16.mxu0 %vm374_vm1, %v2023_v8 }
  0x1e   :  { %1957 = vmatmul.mubr.msk.bf16.gmra.mrb[12].mxu0 %vm374_vm1, %v2024_v12 }
  0x1f   :  { %1960 = vmatprep.mubr.msk.bf16.mxu0 %vm374_vm1, %v2025_v15 }
  0x20   :  { %11 = vsyncpa [#allocation6], 0  ;;  %v2026_v17 = vld [vmem:[%s2516_s0 + $0x48] sm:$0xff]   ;;  %v2039_v18 = vld [vmem:[%s2516_s0 + $0xb0] sm:$0xff]   ;;  %1985 = vmatmul.mubr.msk.bf16.gmra.mrb[8].mxu1 %vm374_vm1, %v2038_v16 }
  0x21   :  { %v2027_v19 = vld [vmem:[%s2516_s0 + $0x50] sm:$0xff]   ;;  %1988 = vmatprep.mubr.msk.bf16.mxu1 %vm374_vm1, %v2039_v18  ;;  %v2040_v20 = vld [vmem:[%s2516_s0 + $0xb8] sm:$0xff]   ;;  %v2041_v22 = vld [vmem:[%s2516_s0 + $0xc0] sm:$0xff]  }
  0x22   :  { %v2028_v21 = vld [vmem:[%s2516_s0 + $0x58] sm:$0xff]   ;;  %v2029_v23 = vld [vmem:[%s2516_s0 + $0x60] sm:$0xff]   ;;  %v2042_v24 = vld [vmem:[%s2516_s0 + $0xc8] sm:$0xff]  }
  0x23   :  { %v2030_v25 = vld [vmem:[%s2516_s0 + $0x68] sm:$0xff]   ;;  %v2043_v26 = vld [vmem:[%s2516_s0 + $0xd0] sm:$0xff]   ;;  %v2044_v28 = vld [vmem:[%s2516_s0 + $0xd8] sm:$0xff]  }
  0x24   :  { %v2031_v27 = vld [vmem:[%s2516_s0 + $0x70] sm:$0xff]   ;;  %v2032_v29 = vld [vmem:[%s2516_s0 + $0x78] sm:$0xff]   ;;  %v2045_v30 = vld [vmem:[%s2516_s0 + $0xe0] sm:$0xff]  }
  0x25   :  { %v2046_v31 = vld [vmem:[%s2516_s0 + $0xe8] sm:$0xff]   ;;  %v2047_v32 = vld [vmem:[%s2516_s0 + $0xf0] sm:$0xff]   ;;  %v2048_v33 = vld [vmem:[%s2516_s0 + $0xf8] sm:$0xff]   ;;  %s2119_s0 = smov [#allocation3]  }
  0x26   :  { %1961 = vmatmul.mubr.msk.bf16.gmra.mrb[16].mxu0 %vm374_vm1, %v2026_v17  ;;  %s1488_s26 = sshll.u32 %s2119_s0, 4  ;;  %s1489_s26 = int_to_ptr.vmem [resolvable:$true] %s1488_s26 }
  0x27   :  { %1964 = vmatprep.mubr.msk.bf16.mxu0 %vm374_vm1, %v2027_v19  ;;  %s2049_s27 = scalar_lea.vmem %s1489_s26, 4096  ;;  %p2054_p1 = scmp.lt.s32.totalorder %s1489_s26, %s1489_s26 }
  0x28   :  { %1989 = vmatmul.mubr.msk.bf16.gmra.mrb[12].mxu1 %vm374_vm1, %v2040_v20  ;;  %p2050_p0 = scmp.ne.s32.totalorder %s1489_s26, %s2049_s27  ;;  %p2055_p2 = scmp.lt.s32.totalorder %s2049_s27, %s2049_s27 }
  0x29   :  { %1992 = vmatprep.mubr.msk.bf16.mxu1 %vm374_vm1, %v2041_v22 }
  0x2a   :  { %p2056_p3 = por %p2055_p2, %p2054_p1 }
  0x2c   :  { %p2057_p4 = pnand %p2056_p3, %p2050_p0 }
  0x2e   :  { %1965 = vmatmul.mubr.msk.bf16.gmra.mrb[20].mxu0 %vm374_vm1, %v2028_v21 }
  0x2f   :  { %1968 = vmatprep.mubr.msk.bf16.mxu0 %vm374_vm1, %v2029_v23 }
  0x30   :  { %1993 = vmatmul.mubr.msk.bf16.gmra.mrb[16].mxu1 %vm374_vm1, %v2042_v24 }
  0x31   :  { %1996 = vmatprep.mubr.msk.bf16.mxu1 %vm374_vm1, %v2043_v26 }
  0x36   :  { %1969 = vmatmul.mubr.msk.bf16.gmra.mrb[24].mxu0 %vm374_vm1, %v2030_v25 }
  0x37   :  { %1972 = vmatprep.mubr.msk.bf16.mxu0 %vm374_vm1, %v2031_v27 }
  0x38   :  { %1997 = vmatmul.mubr.msk.bf16.gmra.mrb[20].mxu1 %vm374_vm1, %v2044_v28 }
  0x39   :  { %2000 = vmatprep.mubr.msk.bf16.mxu1 %vm374_vm1, %v2045_v30 }
  0x3e   :  { %1973 = vmatmul.mubr.msk.bf16.gmra.mrb[28].mxu0 %vm374_vm1, %v2032_v29 }
  0x40   :  { %2001 = vmatmul.mubr.msk.bf16.gmra.mrb[24].mxu1 %vm374_vm1, %v2046_v31 }
  0x41   :  { %2004 = vmatprep.mubr.msk.bf16.mxu1 %vm374_vm1, %v2047_v32 }
  0x48   :  { %2005 = vmatmul.mubr.msk.bf16.gmra.mrb[28].mxu1 %vm374_vm1, %v2048_v33 }
  0xd9   :  { %v1946_v34 = vpop.f32.mrb[0].mxu0 }
  0xda   :  { %v509_v35 = vpop.f32.mrb[1].mxu0  ;;  %v1351_v43 = vmul.f32 %v1946_v34, %v1946_v34  ;;  %v2280_v0 = vpop.f32.mrb[0].mxu1 }
  0xdb   :  { %v1947_v36 = vpop.f32.mrb[2].mxu0  ;;  %v1349_v39 = vmul.f32 %v509_v35, %v509_v35  ;;  %v2282_v5 = vpop.f32.mrb[1].mxu1 }
  0xdc   :  { %v1726_v37 = vpack.c.bf16 %v1947_v36, %v1946_v34  ;;  %v512_v38 = vpop.f32.mrb[3].mxu0  ;;  %v1352_v46 = vmul.f32 %v1947_v36, %v1947_v36  ;;  %v2284_v7 = vpop.f32.mrb[2].mxu1 }
  0xdd   :  { %v1721_v40 = vpack.c.bf16 %v512_v38, %v509_v35  ;;  %v1279_v41 = vadd.f32 %v512_v38, %v509_v35  ;;  %v1350_v42 = vmul.f32 %v512_v38, %v512_v38  ;;  %v1806_v12 = vpack.c.bf16 %v2284_v7, %v2280_v0  ;;  %v2288_v13 = vpop.f32.mrb[3].mxu1 }
  0xde   :  { %1878 = vst [vmem:[#allocation3 + $0x8] sm:$0xff] %v1726_v37   ;;  %v1801_v16 = vpack.c.bf16 %v2288_v13, %v2282_v5 }
  0xdf   :  { %1722 = vst [vmem:[#allocation3] sm:$0xff] %v1721_v40   ;;  %v1280_v44 = vadd.f32 %v1946_v34, %v1279_v41  ;;  %v1413_v45 = vadd.f32 %v1350_v42, %v1349_v39  ;;  %1894 = vst [vmem:[#allocation3 + $0x88] sm:$0xff] %v1806_v12  }
  0xe0   :  { %1893 = vst [vmem:[#allocation3 + $0x80] sm:$0xff] %v1801_v16  }
  0xe1   :  { %v1414_v47 = vadd.f32 %v1413_v45, %v1351_v43  ;;  %v1950_v48 = vpop.f32.mrb[4].mxu0  ;;  %v1281_v49 = vadd.f32 %v1947_v36, %v1280_v44 }
  0xe2   :  { %v525_v50 = vpop.f32.mrb[5].mxu0  ;;  %v1355_v61 = vmul.f32 %v1950_v48, %v1950_v48  ;;  %v2292_v24 = vpop.f32.mrb[4].mxu1 }
  0xe3   :  { %v1282_v51 = vadd.f32 %v1281_v49, %v525_v50  ;;  %v1353_v52 = vmul.f32 %v525_v50, %v525_v50  ;;  %v1415_v53 = vadd.f32 %v1414_v47, %v1352_v46  ;;  %v1951_v54 = vpop.f32.mrb[6].mxu0  ;;  %v2294_v29 = vpop.f32.mrb[5].mxu1 }
  0xe4   :  { %v1736_v55 = vpack.c.bf16 %v1951_v54, %v1950_v48  ;;  %v528_v56 = vpop.f32.mrb[7].mxu0  ;;  %v1356_v1 = vmul.f32 %v1951_v54, %v1951_v54  ;;  %v2296_v31 = vpop.f32.mrb[6].mxu1 }
  0xe5   :  { %v1416_v57 = vadd.f32 %v1415_v53, %v1353_v52  ;;  %v1731_v58 = vpack.c.bf16 %v528_v56, %v525_v50  ;;  %v1283_v59 = vadd.f32 %v1282_v51, %v528_v56  ;;  %v1354_v60 = vmul.f32 %v528_v56, %v528_v56  ;;  %v2300_v37 = vpop.f32.mrb[7].mxu1 }
  0xe6   :  { %1880 = vst [vmem:[#allocation3 + $0x18] sm:$0xff] %v1736_v55   ;;  %v1816_v36 = vpack.c.bf16 %v2296_v31, %v2292_v24  ;;  %v1811_v40 = vpack.c.bf16 %v2300_v37, %v2294_v29 }
  0xe7   :  { %1879 = vst [vmem:[#allocation3 + $0x10] sm:$0xff] %v1731_v58   ;;  %v1284_v62 = vadd.f32 %v1950_v48, %v1283_v59  ;;  %v1417_v63 = vadd.f32 %v1416_v57, %v1354_v60 }
  0xe8   :  { %1896 = vst [vmem:[#allocation3 + $0x98] sm:$0xff] %v1816_v36   ;;  %1895 = vst [vmem:[#allocation3 + $0x90] sm:$0xff] %v1811_v40  }
  0xe9   :  { %v1418_v2 = vadd.f32 %v1417_v63, %v1355_v61  ;;  %v1954_v3 = vpop.f32.mrb[8].mxu0  ;;  %v1285_v4 = vadd.f32 %v1951_v54, %v1284_v62 }
  0xea   :  { %v541_v6 = vpop.f32.mrb[9].mxu0  ;;  %v1359_v21 = vmul.f32 %v1954_v3, %v1954_v3 }
  0xeb   :  { %v1286_v8 = vadd.f32 %v1285_v4, %v541_v6  ;;  %v1357_v9 = vmul.f32 %v541_v6, %v541_v6  ;;  %v1419_v10 = vadd.f32 %v1418_v2, %v1356_v1  ;;  %v1955_v11 = vpop.f32.mrb[10].mxu0 }
  0xec   :  { %v1746_v14 = vpack.c.bf16 %v1955_v11, %v1954_v3  ;;  %v544_v15 = vpop.f32.mrb[11].mxu0  ;;  %v1360_v25 = vmul.f32 %v1955_v11, %v1955_v11 }
  0xed   :  { %v1420_v17 = vadd.f32 %v1419_v10, %v1357_v9  ;;  %v1741_v18 = vpack.c.bf16 %v544_v15, %v541_v6  ;;  %v1287_v19 = vadd.f32 %v1286_v8, %v544_v15  ;;  %v1358_v20 = vmul.f32 %v544_v15, %v544_v15 }
  0xee   :  { %1882 = vst [vmem:[#allocation3 + $0x28] sm:$0xff] %v1746_v14  }
  0xef   :  { %1881 = vst [vmem:[#allocation3 + $0x20] sm:$0xff] %v1741_v18   ;;  %v1288_v22 = vadd.f32 %v1954_v3, %v1287_v19  ;;  %v1421_v23 = vadd.f32 %v1420_v17, %v1358_v20 }
  0xf1   :  { %v1422_v26 = vadd.f32 %v1421_v23, %v1359_v21  ;;  %v1958_v27 = vpop.f32.mrb[12].mxu0  ;;  %v1289_v28 = vadd.f32 %v1955_v11, %v1288_v22 }
  0xf2   :  { %v557_v30 = vpop.f32.mrb[13].mxu0  ;;  %v1363_v45 = vmul.f32 %v1958_v27, %v1958_v27 }
  0xf3   :  { %v1290_v32 = vadd.f32 %v1289_v28, %v557_v30  ;;  %v1361_v33 = vmul.f32 %v557_v30, %v557_v30  ;;  %v1423_v34 = vadd.f32 %v1422_v26, %v1360_v25  ;;  %v1959_v35 = vpop.f32.mrb[14].mxu0  ;;  %v2304_v48 = vpop.f32.mrb[8].mxu1 }
  0xf4   :  { %v1756_v38 = vpack.c.bf16 %v1959_v35, %v1958_v27  ;;  %v560_v39 = vpop.f32.mrb[15].mxu0  ;;  %v1364_v49 = vmul.f32 %v1959_v35, %v1959_v35  ;;  %v2306_v53 = vpop.f32.mrb[9].mxu1 }
  0xf5   :  { %v1424_v41 = vadd.f32 %v1423_v34, %v1361_v33  ;;  %v1751_v42 = vpack.c.bf16 %v560_v39, %v557_v30  ;;  %v1291_v43 = vadd.f32 %v1290_v32, %v560_v39  ;;  %v1362_v44 = vmul.f32 %v560_v39, %v560_v39  ;;  %v2308_v55 = vpop.f32.mrb[10].mxu1 }
  0xf6   :  { %1884 = vst [vmem:[#allocation3 + $0x38] sm:$0xff] %v1756_v38   ;;  %v1826_v60 = vpack.c.bf16 %v2308_v55, %v2304_v48  ;;  %v2312_v61 = vpop.f32.mrb[11].mxu1 }
  0xf7   :  { %1883 = vst [vmem:[#allocation3 + $0x30] sm:$0xff] %v1751_v42   ;;  %v1292_v46 = vadd.f32 %v1958_v27, %v1291_v43  ;;  %v1425_v47 = vadd.f32 %v1424_v41, %v1362_v44  ;;  %v1821_v1 = vpack.c.bf16 %v2312_v61, %v2306_v53 }
  0xf8   :  { %1898 = vst [vmem:[#allocation3 + $0xa8] sm:$0xff] %v1826_v60  }
  0xf9   :  { %v1426_v50 = vadd.f32 %v1425_v47, %v1363_v45  ;;  %v1962_v51 = vpop.f32.mrb[16].mxu0  ;;  %v1293_v52 = vadd.f32 %v1959_v35, %v1292_v46  ;;  %1897 = vst [vmem:[#allocation3 + $0xa0] sm:$0xff] %v1821_v1  }
  0xfa   :  { %v573_v54 = vpop.f32.mrb[17].mxu0  ;;  %v1367_v8 = vmul.f32 %v1962_v51, %v1962_v51 }
  0xfb   :  { %v1294_v56 = vadd.f32 %v1293_v52, %v573_v54  ;;  %v1365_v57 = vmul.f32 %v573_v54, %v573_v54  ;;  %v1427_v58 = vadd.f32 %v1426_v50, %v1364_v49  ;;  %v1963_v59 = vpop.f32.mrb[18].mxu0  ;;  %v2316_v11 = vpop.f32.mrb[12].mxu1 }
  0xfc   :  { %v1766_v62 = vpack.c.bf16 %v1963_v59, %v1962_v51  ;;  %v576_v63 = vpop.f32.mrb[19].mxu0  ;;  %v1368_v12 = vmul.f32 %v1963_v59, %v1963_v59  ;;  %v2318_v17 = vpop.f32.mrb[13].mxu1 }
  0xfd   :  { %v1428_v2 = vadd.f32 %v1427_v58, %v1365_v57  ;;  %v1761_v3 = vpack.c.bf16 %v576_v63, %v573_v54  ;;  %v1295_v4 = vadd.f32 %v1294_v56, %v576_v63  ;;  %v1366_v6 = vmul.f32 %v576_v63, %v576_v63  ;;  %v2320_v19 = vpop.f32.mrb[14].mxu1 }
  0xfe   :  { %1886 = vst [vmem:[#allocation3 + $0x48] sm:$0xff] %v1766_v62   ;;  %v1836_v25 = vpack.c.bf16 %v2320_v19, %v2316_v11  ;;  %v2324_v26 = vpop.f32.mrb[15].mxu1 }
  0xff   :  { %1885 = vst [vmem:[#allocation3 + $0x40] sm:$0xff] %v1761_v3   ;;  %v1296_v9 = vadd.f32 %v1962_v51, %v1295_v4  ;;  %v1429_v10 = vadd.f32 %v1428_v2, %v1366_v6  ;;  %v1831_v30 = vpack.c.bf16 %v2324_v26, %v2318_v17 }
 0x100   :  { %1900 = vst [vmem:[#allocation3 + $0xb8] sm:$0xff] %v1836_v25  }
 0x101   :  { %v1430_v14 = vadd.f32 %v1429_v10, %v1367_v8  ;;  %v1966_v15 = vpop.f32.mrb[20].mxu0  ;;  %v1297_v16 = vadd.f32 %v1963_v59, %v1296_v9  ;;  %1899 = vst [vmem:[#allocation3 + $0xb0] sm:$0xff] %v1831_v30  }
 0x102   :  { %v589_v18 = vpop.f32.mrb[21].mxu0  ;;  %v1371_v36 = vmul.f32 %v1966_v15, %v1966_v15 }
 0x103   :  { %v1298_v20 = vadd.f32 %v1297_v16, %v589_v18  ;;  %v1369_v21 = vmul.f32 %v589_v18, %v589_v18  ;;  %v1431_v22 = vadd.f32 %v1430_v14, %v1368_v12  ;;  %v1967_v23 = vpop.f32.mrb[22].mxu0  ;;  %v2328_v40 = vpop.f32.mrb[16].mxu1 }
 0x104   :  { %v1776_v27 = vpack.c.bf16 %v1967_v23, %v1966_v15  ;;  %v592_v28 = vpop.f32.mrb[23].mxu0  ;;  %v1372_v41 = vmul.f32 %v1967_v23, %v1967_v23  ;;  %v2330_v45 = vpop.f32.mrb[17].mxu1 }
 0x105   :  { %v1432_v32 = vadd.f32 %v1431_v22, %v1369_v21  ;;  %v1771_v33 = vpack.c.bf16 %v592_v28, %v589_v18  ;;  %v1299_v34 = vadd.f32 %v1298_v20, %v592_v28  ;;  %v1370_v35 = vmul.f32 %v592_v28, %v592_v28  ;;  %v2332_v47 = vpop.f32.mrb[18].mxu1 }
 0x106   :  { %1888 = vst [vmem:[#allocation3 + $0x58] sm:$0xff] %v1776_v27   ;;  %v1846_v54 = vpack.c.bf16 %v2332_v47, %v2328_v40  ;;  %v2336_v56 = vpop.f32.mrb[19].mxu1 }
 0x107   :  { %1887 = vst [vmem:[#allocation3 + $0x50] sm:$0xff] %v1771_v33   ;;  %v1300_v38 = vadd.f32 %v1966_v15, %v1299_v34  ;;  %v1433_v39 = vadd.f32 %v1432_v32, %v1370_v35  ;;  %v1841_v59 = vpack.c.bf16 %v2336_v56, %v2330_v45 }
 0x108   :  { %1902 = vst [vmem:[#allocation3 + $0xc8] sm:$0xff] %v1846_v54  }
 0x109   :  { %v1434_v42 = vadd.f32 %v1433_v39, %v1371_v36  ;;  %v1970_v43 = vpop.f32.mrb[24].mxu0  ;;  %v1301_v44 = vadd.f32 %v1967_v23, %v1300_v38  ;;  %1901 = vst [vmem:[#allocation3 + $0xc0] sm:$0xff] %v1841_v59  }
 0x10a   :  { %v605_v46 = vpop.f32.mrb[25].mxu0  ;;  %v1375_v2 = vmul.f32 %v1970_v43, %v1970_v43 }
 0x10b   :  { %v1302_v49 = vadd.f32 %v1301_v44, %v605_v46  ;;  %v1373_v50 = vmul.f32 %v605_v46, %v605_v46  ;;  %v1435_v51 = vadd.f32 %v1434_v42, %v1372_v41  ;;  %v1971_v52 = vpop.f32.mrb[26].mxu0  ;;  %v2340_v6 = vpop.f32.mrb[20].mxu1 }
 0x10c   :  { %v1786_v57 = vpack.c.bf16 %v1971_v52, %v1970_v43  ;;  %v608_v58 = vpop.f32.mrb[27].mxu0  ;;  %v1376_v8 = vmul.f32 %v1971_v52, %v1971_v52  ;;  %v2342_v14 = vpop.f32.mrb[21].mxu1 }
 0x10d   :  { %v1436_v60 = vadd.f32 %v1435_v51, %v1373_v50  ;;  %v1781_v62 = vpack.c.bf16 %v608_v58, %v605_v46  ;;  %v1303_v63 = vadd.f32 %v1302_v49, %v608_v58  ;;  %v1374_v1 = vmul.f32 %v608_v58, %v608_v58  ;;  %v2344_v16 = vpop.f32.mrb[22].mxu1 }
 0x10e   :  { %1890 = vst [vmem:[#allocation3 + $0x68] sm:$0xff] %v1786_v57   ;;  %v1856_v23 = vpack.c.bf16 %v2344_v16, %v2340_v6  ;;  %v2348_v25 = vpop.f32.mrb[23].mxu1  ;;  %v1381_v46 = vmul.f32 %v2282_v5, %v2282_v5 }
 0x10f   :  { %1889 = vst [vmem:[#allocation3 + $0x60] sm:$0xff] %v1781_v62   ;;  %v1304_v3 = vadd.f32 %v1970_v43, %v1303_v63  ;;  %v1437_v4 = vadd.f32 %v1436_v60, %v1374_v1  ;;  %v1851_v30 = vpack.c.bf16 %v2348_v25, %v2342_v14  ;;  %v1382_v62 = vmul.f32 %v2288_v13, %v2288_v13 }
 0x110   :  { %1904 = vst [vmem:[#allocation3 + $0xd8] sm:$0xff] %v1856_v23  }
 0x111   :  { %v1438_v9 = vadd.f32 %v1437_v4, %v1375_v2  ;;  %v1974_v10 = vpop.f32.mrb[28].mxu0  ;;  %v1305_v12 = vadd.f32 %v1971_v52, %v1304_v3  ;;  %1903 = vst [vmem:[#allocation3 + $0xd0] sm:$0xff] %v1851_v30   ;;  %v1384_v3 = vmul.f32 %v2284_v7, %v2284_v7 }
 0x112   :  { %v621_v15 = vpop.f32.mrb[29].mxu0  ;;  %v1379_v36 = vmul.f32 %v1974_v10, %v1974_v10 }
 0x113   :  { %v1306_v18 = vadd.f32 %v1305_v12, %v621_v15  ;;  %v1377_v20 = vmul.f32 %v621_v15, %v621_v15  ;;  %v1439_v21 = vadd.f32 %v1438_v9, %v1376_v8  ;;  %v1975_v22 = vpop.f32.mrb[30].mxu0  ;;  %v2352_v41 = vpop.f32.mrb[24].mxu1 }
 0x114   :  { %v1796_v27 = vpack.c.bf16 %v1975_v22, %v1974_v10  ;;  %v624_v28 = vpop.f32.mrb[31].mxu0  ;;  %v1380_v42 = vmul.f32 %v1975_v22, %v1975_v22  ;;  %v2356_v49 = vpop.f32.mrb[25].mxu1 }
 0x115   :  { %v1440_v32 = vadd.f32 %v1439_v21, %v1377_v20  ;;  %v1791_v33 = vpack.c.bf16 %v624_v28, %v621_v15  ;;  %v1307_v34 = vadd.f32 %v1306_v18, %v624_v28  ;;  %v1378_v35 = vmul.f32 %v624_v28, %v624_v28  ;;  %v2358_v50 = vpop.f32.mrb[26].mxu1 }
 0x116   :  { %1892 = vst [vmem:[#allocation3 + $0x78] sm:$0xff] %v1796_v27   ;;  %v1866_v54 = vpack.c.bf16 %v2358_v50, %v2352_v41  ;;  %v2363_v57 = vpop.f32.mrb[27].mxu1 }
 0x117   :  { %1891 = vst [vmem:[#allocation3 + $0x70] sm:$0xff] %v1791_v33   ;;  %v1308_v38 = vadd.f32 %v1974_v10, %v1307_v34  ;;  %v1441_v39 = vadd.f32 %v1440_v32, %v1378_v35  ;;  %v1861_v58 = vpack.c.bf16 %v2363_v57, %v2356_v49 }
 0x118   :  { %1906 = vst [vmem:[#allocation3 + $0xe8] sm:$0xff] %v1866_v54  }
 0x119   :  { %v1442_v43 = vadd.f32 %v1441_v39, %v1379_v36  ;;  %v1309_v44 = vadd.f32 %v1975_v22, %v1308_v38  ;;  %1905 = vst [vmem:[#allocation3 + $0xe0] sm:$0xff] %v1861_v58   ;;  %v1386_v22 = vmul.f32 %v2300_v37, %v2300_v37 }
 0x11b   :  { %v1310_v51 = vadd.f32 %v1309_v44, %v2282_v5  ;;  %v1443_v52 = vadd.f32 %v1442_v43, %v1380_v42  ;;  %v1383_v5 = vmul.f32 %v2280_v0, %v2280_v0  ;;  %v2373_v2 = vpop.f32.mrb[28].mxu1 }
 0x11c   :  { %v2380_v9 = vpop.f32.mrb[29].mxu1 }
 0x11d   :  { %v1444_v59 = vadd.f32 %v1443_v52, %v1381_v46  ;;  %v1311_v60 = vadd.f32 %v1310_v51, %v2288_v13  ;;  %v1385_v13 = vmul.f32 %v2294_v29, %v2294_v29  ;;  %v2382_v10 = vpop.f32.mrb[30].mxu1 }
 0x11e   :  { %v1876_v15 = vpack.c.bf16 %v2382_v10, %v2373_v2  ;;  %v2387_v18 = vpop.f32.mrb[31].mxu1 }
 0x11f   :  { %v1312_v63 = vadd.f32 %v2280_v0, %v1311_v60  ;;  %v1445_v1 = vadd.f32 %v1444_v59, %v1382_v62  ;;  %v1871_v20 = vpack.c.bf16 %v2387_v18, %v2380_v9 }
 0x120   :  { %1908 = vst [vmem:[#allocation3 + $0xf8] sm:$0xff] %v1876_v15  }
 0x121   :  { %v1446_v4 = vadd.f32 %v1445_v1, %v1383_v5  ;;  %v1313_v8 = vadd.f32 %v2284_v7, %v1312_v63  ;;  %1907 = vst [vmem:[#allocation3 + $0xf0] sm:$0xff] %v1871_v20  }
 0x123   :  { %v1314_v0 = vadd.f32 %v1313_v8, %v2294_v29  ;;  %v1447_v12 = vadd.f32 %v1446_v4, %v1384_v3  ;;  %v1387_v29 = vmul.f32 %v2292_v24, %v2292_v24 }
 0x125   :  { %v1448_v7 = vadd.f32 %v1447_v12, %v1385_v13  ;;  %v1315_v21 = vadd.f32 %v1314_v0, %v2300_v37 }
 0x127   :  { %v1316_v23 = vadd.f32 %v2292_v24, %v1315_v21  ;;  %v1449_v27 = vadd.f32 %v1448_v7, %v1386_v22 }
 0x128   :  { %2060 = shalt.err (!%p2057_p4)
}
 0x129   :  { %s2061_s30 = scalar_lea.hbm %s2518_s2, 4096 }
 0x12a   :  { %p2062_p5 = scmp.ne.s32.totalorder %s2518_s2, %s2061_s30  ;;  %p2065_p6 = scmp.lt.u32.totalorder %s2061_s30, %s2518_s2 }
 0x12c   :  { %p2067_p7 = pnand %p2065_p6, %p2062_p5 }
 0x12e   :  { %2070 = shalt.err (!%p2067_p7)
}
 0x12f   :  { %s2120_s9 = smov 64   ;;  %s2121_s10 = smov 4   ;;  %v1388_v24 = vmul.f32 %v2296_v31, %v2296_v31  ;;  %v1450_v37 = vadd.f32 %v1449_v27, %v1387_v29  ;;  %v1317_v28 = vadd.f32 %v2296_v31, %v1316_v23  ;;  %v1389_v30 = vmul.f32 %v2306_v53, %v2306_v53 }
 0x130   :  { %1494 = dma.vmem_to_hbm [thread:$0]  %s1489_s26, 4096, %s2518_s2, [#allocation4], %s2120_s9, %s2120_s9, %s2121_s10   ;;  %v1390_v36 = vmul.f32 %v2312_v61, %v2312_v61  ;;  %v1391_v38 = vmul.f32 %v2304_v48, %v2304_v48  ;;  %v1392_v31 = vmul.f32 %v2308_v55, %v2308_v55  ;;  %v1394_v54 = vmul.f32 %v2324_v26, %v2324_v26 }
 0x131   :  { %v1318_v32 = vadd.f32 %v1317_v28, %v2306_v53  ;;  %v1451_v33 = vadd.f32 %v1450_v37, %v1388_v24  ;;  %v1393_v53 = vmul.f32 %v2318_v17, %v2318_v17  ;;  %v1398_v3 = vmul.f32 %v2336_v56, %v2336_v56  ;;  %s2122_s2 = smov [#allocation5]   ;;  %s2123_s14 = smov [#allocation7]  }
 0x132   :  { %v1402_v7 = vmul.f32 %v2348_v25, %v2348_v25  ;;  %v1406_v28 = vmul.f32 %v2363_v57, %v2363_v57  ;;  %s1501_s13 = sshll.u32 %s2122_s2, 4  ;;  %s1511_s15 = sshll.u32 %s2123_s14, 4  ;;  %s1502_s13 = int_to_ptr.vmem [resolvable:$true] %s1501_s13  ;;  %s2484_s15 = int_to_ptr.vmem [resolvable:$true] %s1511_s15 }
 0x133   :  { %v1452_v34 = vadd.f32 %v1451_v33, %v1389_v30  ;;  %v1319_v35 = vadd.f32 %v1318_v32, %v2312_v61  ;;  %s2071_s16 = scalar_lea.vmem %s1502_s13, 16  ;;  %s2075_s17 = scalar_lea.vmem %s1502_s13, 32 }
 0x134   :  { %p2072_p8 = scmp.ne.s32.totalorder %s1502_s13, %s2071_s16  ;;  %p2076_p9 = scmp.lt.s32.totalorder %s1502_s13, %s1502_s13 }
 0x135   :  { %v1320_v39 = vadd.f32 %v2304_v48, %v1319_v35  ;;  %v1453_v42 = vadd.f32 %v1452_v34, %v1390_v36  ;;  %v1395_v48 = vmul.f32 %v2316_v11, %v2316_v11  ;;  %p2077_p10 = scmp.lt.s32.totalorder %s2075_s17, %s2071_s16 }
 0x137   :  { %v1454_v43 = vadd.f32 %v1453_v42, %v1391_v38  ;;  %v1321_v44 = vadd.f32 %v2308_v55, %v1320_v39  ;;  %v1396_v55 = vmul.f32 %v2320_v19, %v2320_v19  ;;  %v1410_v39 = vmul.f32 %v2387_v18, %v2387_v18  ;;  %p2078_p11 = por %p2077_p10, %p2076_p9 }
 0x139   :  { %v1322_v46 = vadd.f32 %v1321_v44, %v2318_v17  ;;  %v1455_v51 = vadd.f32 %v1454_v43, %v1392_v31  ;;  %v1397_v17 = vmul.f32 %v2330_v45, %v2330_v45  ;;  %p2079_p12 = pnand %p2078_p11, %p2072_p8 }
 0x13b   :  { %v1456_v52 = vadd.f32 %v1455_v51, %v1393_v53  ;;  %v1323_v61 = vadd.f32 %v1322_v46, %v2324_v26 }
 0x13d   :  { %v1324_v58 = vadd.f32 %v2316_v11, %v1323_v61  ;;  %v1457_v59 = vadd.f32 %v1456_v52, %v1394_v54  ;;  %v1399_v11 = vmul.f32 %v2328_v40, %v2328_v40 }
 0x13f   :  { %v1458_v60 = vadd.f32 %v1457_v59, %v1395_v48  ;;  %v1325_v62 = vadd.f32 %v2320_v19, %v1324_v58  ;;  %v1400_v19 = vmul.f32 %v2332_v47, %v2332_v47 }
 0x141   :  { %v1326_v5 = vadd.f32 %v1325_v62, %v2330_v45  ;;  %v1459_v63 = vadd.f32 %v1458_v60, %v1396_v55  ;;  %v1401_v45 = vmul.f32 %v2342_v14, %v2342_v14 }
 0x143   :  { %v1460_v1 = vadd.f32 %v1459_v63, %v1397_v17  ;;  %v1327_v26 = vadd.f32 %v1326_v5, %v2336_v56 }
 0x145   :  { %v1328_v4 = vadd.f32 %v2328_v40, %v1327_v26  ;;  %v1461_v8 = vadd.f32 %v1460_v1, %v1398_v3  ;;  %v1403_v40 = vmul.f32 %v2340_v6, %v2340_v6 }
 0x147   :  { %v1462_v13 = vadd.f32 %v1461_v8, %v1399_v11  ;;  %v1329_v0 = vadd.f32 %v2332_v47, %v1328_v4  ;;  %v1404_v47 = vmul.f32 %v2344_v16, %v2344_v16 }
 0x149   :  { %v1330_v12 = vadd.f32 %v1329_v0, %v2342_v14  ;;  %v1463_v15 = vadd.f32 %v1462_v13, %v1400_v19  ;;  %v1405_v14 = vmul.f32 %v2356_v49, %v2356_v49 }
 0x14b   :  { %v1464_v20 = vadd.f32 %v1463_v15, %v1401_v45  ;;  %v1331_v56 = vadd.f32 %v1330_v12, %v2348_v25 }
 0x14d   :  { %v1332_v21 = vadd.f32 %v2340_v6, %v1331_v56  ;;  %v1465_v22 = vadd.f32 %v1464_v20, %v1402_v7  ;;  %v1407_v6 = vmul.f32 %v2352_v41, %v2352_v41 }
 0x14f   :  { %v1466_v29 = vadd.f32 %v1465_v22, %v1403_v40  ;;  %v1333_v23 = vadd.f32 %v2344_v16, %v1332_v21  ;;  %v1408_v16 = vmul.f32 %v2358_v50, %v2358_v50 }
 0x151   :  { %v1334_v27 = vadd.f32 %v1333_v23, %v2356_v49  ;;  %v1467_v24 = vadd.f32 %v1466_v29, %v1404_v47  ;;  %v1409_v49 = vmul.f32 %v2380_v9, %v2380_v9 }
 0x153   :  { %v1468_v37 = vadd.f32 %v1467_v24, %v1405_v14  ;;  %v1335_v25 = vadd.f32 %v1334_v27, %v2363_v57 }
 0x155   :  { %v1336_v30 = vadd.f32 %v2352_v41, %v1335_v25  ;;  %v1469_v32 = vadd.f32 %v1468_v37, %v1406_v28  ;;  %v1411_v41 = vmul.f32 %v2373_v2, %v2373_v2 }
 0x157   :  { %v1470_v33 = vadd.f32 %v1469_v32, %v1407_v6  ;;  %v1337_v34 = vadd.f32 %v2358_v50, %v1336_v30  ;;  %v1412_v50 = vmul.f32 %v2382_v10, %v2382_v10 }
 0x159   :  { %v1338_v35 = vadd.f32 %v1337_v34, %v2380_v9  ;;  %v1471_v36 = vadd.f32 %v1470_v33, %v1408_v16 }
 0x15b   :  { %v1472_v38 = vadd.f32 %v1471_v36, %v1409_v49  ;;  %v1339_v57 = vadd.f32 %v1338_v35, %v2387_v18 }
 0x15d   :  { %v1340_v42 = vadd.f32 %v2373_v2, %v1339_v57  ;;  %v1473_v31 = vadd.f32 %v1472_v38, %v1410_v39 }
 0x15f   :  { %v1341_v43 = vadd.f32 %v2382_v10, %v1340_v42  ;;  %v1474_v44 = vadd.f32 %v1473_v31, %v1411_v41 }
 0x161   :  { %v1342_v9 = vrot.slane %v1341_v43, 4  ;;  %v1475_v53 = vadd.f32 %v1474_v44, %v1412_v50 }
 0x163   :  { %v1343_v46 = vadd.f32 %v1342_v9, %v1341_v43  ;;  %v1476_v51 = vrot.slane %v1475_v53, 4 }
 0x165   :  { %v1344_v52 = vrot.slane %v1343_v46, 2  ;;  %v1477_v61 = vadd.f32 %v1476_v51, %v1475_v53 }
 0x167   :  { %v1345_v54 = vadd.f32 %v1344_v52, %v1343_v46  ;;  %v1478_v18 = vrot.slane %v1477_v61, 2 }
 0x169   :  { %v1346_v48 = vrot.slane %v1345_v54, 1  ;;  %v1479_v58 = vadd.f32 %v1478_v18, %v1477_v61 }
 0x16b   :  { %v1347_v2 = vadd.f32 %v1346_v48, %v1345_v54  ;;  %v1480_v59 = vrot.slane %v1479_v58, 1 }
 0x16d   :  { %1348 = vst [vmem:[#allocation5] sm:$0x1] %v1347_v2  ;;  %v1481_v10 = vadd.f32 %v1480_v59, %v1479_v58 }
 0x16e   :  { %2082 = shalt.err (!%p2079_p12)
}
 0x16f   :  { %s2083_s20 = scalar_lea.hbm %s2519_s3, 16 }
 0x170   :  { %p2084_p13 = scmp.ne.s32.totalorder %s2519_s3, %s2083_s20  ;;  %p2087_p0 = scmp.lt.u32.totalorder %s2083_s20, %s2519_s3 }
 0x172   :  { %p2089_p1 = pnand %p2087_p0, %p2084_p13 }
 0x174   :  { %2092 = shalt.err (!%p2089_p1)
}
 0x175   :  { %1504 = dma.vmem_to_hbm [thread:$0]  %s1502_s13, 16, %s2519_s3, [#allocation6]   ;;  %1482 = vst [vmem:[#allocation7] sm:$0x1] %v1481_v10 }
 0x176   :  { %s2093_s0 = scalar_lea.vmem %s2484_s15, 16  ;;  %s2097_s26 = scalar_lea.vmem %s2484_s15, 32 }
 0x177   :  { %p2094_p2 = scmp.ne.s32.totalorder %s2484_s15, %s2093_s0  ;;  %p2098_p3 = scmp.lt.s32.totalorder %s2484_s15, %s2484_s15 }
 0x178   :  { %p2099_p4 = scmp.lt.s32.totalorder %s2097_s26, %s2093_s0 }
 0x17a   :  { %p2100_p5 = por %p2099_p4, %p2098_p3 }
 0x17c   :  { %p2101_p6 = pnand %p2100_p5, %p2094_p2 }
 0x17e   :  { %2104 = shalt.err (!%p2101_p6)
}
 0x17f   :  { %s2105_s29 = scalar_lea.hbm %s2520_s4, 16 }
 0x180   :  { %p2106_p7 = scmp.ne.s32.totalorder %s2520_s4, %s2105_s29  ;;  %p2109_p8 = scmp.lt.u32.totalorder %s2105_s29, %s2520_s4 }
 0x182   :  { %p2111_p9 = pnand %p2109_p8, %p2106_p7 }
 0x184   :  { %2114 = shalt.err (!%p2111_p9)
}
 0x185   :  { %1514 = dma.vmem_to_hbm [thread:$0]  %s2484_s15, 16, %s2520_s4, [#allocation6]  }
 0x186   :  { %2115 = dma.done.wait [#allocation4], 4096  }
 0x187   :  { %2116 = vsyncadd [#allocation4], 4294963200 }
 0x188   :  { %2117 = dma.done.wait [#allocation6], 32  }
 0x189   :  { %2118 = vsyncadd [#allocation6], 4294967264 }
 0x18a   :  { %1524 = vsyncpa [#allocation4], 1 }
 0x18b   :  { %1525 = vsyncpa [#allocation6], 1 }

</bundles_post_ra>
